<compile_context>
chip_gen: v6e
topology: v6e:2x2x1
jax: 0.10.0
libtpu: 0.0.40
codegen_flags: <defaults>
</compile_context>

<pallas_src>
import functools

import jax
import jax.numpy as jnp
from jax import lax
from jax.experimental import pallas as pl
from jax.experimental.pallas import tpu as pltpu


def _gated_conv_kernel(x_ref, w_ref, b_ref, o_ref, *, Cout, Ho, Wp, KH, KW, neg_slope):
    """One batch element per grid step (both convs + gating fused, single GEMM).

    x_ref : [1, Cin, L]           flat padded+upsampled image, L = Hp*Wp + KW - 1
    w_ref : [2*Cout, KH*KW*Cin]   fused (image | mask) conv weights, taps flattened (kh, kw, cin)
    b_ref : [2*Cout, 1]           fused biases
    o_ref : [1, Cout, Ho*Wp]      channels-first, flat (garbage columns stripped by wrapper)
    """
    Cin = x_ref.shape[1]
    M = Ho * Wp

    x = x_ref[0]                                      # [Cin, L] in VMEM

    # im2col built from contiguous flat slices: one [Cin, M] row-block per (kh, kw) tap.
    taps = []
    for kh in range(KH):
        for kw in range(KW):
            start = kh * Wp + kw
            taps.append(x[:, start:start + M])        # [Cin, M], static contiguous slice
    patch = jnp.concatenate(taps, axis=0)             # [KH*KW*Cin, M]

    # Single fused MXU matmul for both convolutions; lane-dense f32 accumulator [2*Cout, M].
    acc = jnp.dot(w_ref[...], patch, preferred_element_type=jnp.float32)
    acc = acc + b_ref[...]

    img = acc[:Cout, :]
    msk = acc[Cout:, :]
    gated = jnp.where(img > 0, img, neg_slope * img) * jax.nn.sigmoid(msk)

    o_ref[0] = gated.astype(o_ref.dtype)


def gated_upsample_conv2d(x_nchw, w_img, b_img, w_msk, b_msk,
                          *, scale_factor=2, padding=1, neg_slope=0.2):
    """x_nchw: [N, Cin, H, W]; conv weights HWIO [KH, KW, Cin, Cout]; biases [Cout]."""
    s = int(scale_factor)
    N, Cin, H, W = x_nchw.shape
    KH, KW, _, Cout = w_img.shape

    # TODO(synk): kernel supports stride=1, dilation=1 only (the module defaults used here).
    # TODO(synk): for large spatial sizes, fuse the nearest-upsample/pad into the kernel
    # (parity-phase factorization) and add a row-tiled grid axis with halo; at this size the
    # whole per-batch image fits comfortably in VMEM on v5e/v6e/v7x.
    x_up = jnp.repeat(jnp.repeat(x_nchw, s, axis=2), s, axis=3)        # nearest upsample (NCHW)
    Hu, Wu = s * H, s * W
    Hp, Wp = Hu + 2 * padding, Wu + 2 * padding
    Ho = Hu + 2 * padding - KH + 1
    Wo = Wu + 2 * padding - KW + 1

    xp = jnp.pad(x_up, ((0, 0), (0, 0), (padding, padding), (padding, padding)))
    # Flatten (Hp, Wp) onto the lane axis + KW-1 trailing zeros so every conv tap is a
    # contiguous flat slice inside the kernel.
    L = Hp * Wp + (KW - 1)
    x_flat = jnp.pad(xp.reshape(N, Cin, Hp * Wp), ((0, 0), (0, 0), (0, KW - 1)))

    # Fuse the two convolutions and pre-transpose weights to [2*Cout, KH*KW*Cin]
    # (tap-major (kh, kw, cin) flattening -- must match the in-kernel im2col row order).
    w_cat = jnp.concatenate([w_img, w_msk], axis=-1)                    # [KH, KW, Cin, 2*Cout]
    w_flat = jnp.transpose(w_cat, (3, 0, 1, 2)).reshape(2 * Cout, KH * KW * Cin)
    b_cat = jnp.concatenate([b_img, b_msk], axis=0).reshape(2 * Cout, 1)

    kern = functools.partial(_gated_conv_kernel, Cout=Cout, Ho=Ho, Wp=Wp,
                             KH=KH, KW=KW, neg_slope=neg_slope)

    out_flat = pl.pallas_call(
        kern,
        out_shape=jax.ShapeDtypeStruct((N, Cout, Ho * Wp), x_nchw.dtype),
        grid_spec=pltpu.PrefetchScalarGridSpec(
            num_scalar_prefetch=0,
            grid=(N,),
            in_specs=[
                pl.BlockSpec((1, Cin, L), lambda n: (n, 0, 0)),
                pl.BlockSpec((2 * Cout, KH * KW * Cin), lambda n: (0, 0)),
                pl.BlockSpec((2 * Cout, 1), lambda n: (0, 0)),
            ],
            out_specs=pl.BlockSpec((1, Cout, Ho * Wp), lambda n: (n, 0, 0)),
        ),
        compiler_params=pltpu.CompilerParams(dimension_semantics=("parallel",)),
    )(x_flat, w_flat, b_cat)

    # Drop the Wp-Wo "wrap-around" columns; output is already NCHW -- no transpose needed.
    return out_flat.reshape(N, Cout, Ho, Wp)[:, :, :, :Wo]


def _reference(x_nchw, w_img, b_img, w_msk, b_msk, *, scale_factor=2,
               padding=1, neg_slope=0.2):
    """Pure-JAX reference using lax.conv_general_dilated (for correctness check)."""
    s = int(scale_factor)
    x = jnp.transpose(x_nchw, (0, 2, 3, 1))
    x = jnp.repeat(jnp.repeat(x, s, axis=1), s, axis=2)
    dn = lax.conv_dimension_numbers(x.shape, w_img.shape, ('NHWC', 'HWIO', 'NHWC'))
    conv = lambda w: lax.conv_general_dilated(
        x, w, window_strides=(1, 1),
        padding=[(padding, padding), (padding, padding)], dimension_numbers=dn)
    img = conv(w_img) + b_img[None, None, None, :]
    msk = conv(w_msk) + b_msk[None, None, None, :]
    out = jnp.where(img > 0, img, neg_slope * img) * jax.nn.sigmoid(msk)
    return jnp.transpose(out, (0, 3, 1, 2))


if __name__ == "__main__":
    key = jax.random.PRNGKey(0)
    k_x, k_wi, k_bi, k_wm, k_bm = jax.random.split(key, 5)

    N, Cin, H, W = 2, 4, 16, 16
    Cout, KH, KW = 8, 3, 3
    padding = 1
    scale_factor = 2

    # deterministic parameter init (xavier-normal-like for weights)
    fan_in, fan_out = Cin * KH * KW, Cout * KH * KW
    std = (2.0 / (fan_in + fan_out)) ** 0.5
    w_img = std * jax.random.normal(k_wi, (KH, KW, Cin, Cout), jnp.float32)
    w_msk = std * jax.random.normal(k_wm, (KH, KW, Cin, Cout), jnp.float32)
    bound = 1.0 / (fan_in ** 0.5)
    b_img = jax.random.uniform(k_bi, (Cout,), jnp.float32, -bound, bound)
    b_msk = jax.random.uniform(k_bm, (Cout,), jnp.float32, -bound, bound)

    x = jax.random.normal(k_x, (N, Cin, H, W), jnp.float32)

    out = gated_upsample_conv2d(x, w_img, b_img, w_msk, b_msk,
                                scale_factor=scale_factor, padding=padding)
    out = jax.block_until_ready(out)

    ref = _reference(x, w_img, b_img, w_msk, b_msk,
                     scale_factor=scale_factor, padding=padding)
    ref = jax.block_until_ready(ref)

    assert out.shape == (N, Cout, H * scale_factor, W * scale_factor), out.shape
    assert jnp.allclose(out, ref, atol=1e-4, rtol=1e-4), float(jnp.max(jnp.abs(out - ref)))

    print("KERNEL_OK")
</pallas_src>

<mosaic_0001>
module attributes {stable_mosaic.version = 11 : i64} {
  func.func @_gated_conv_kernel(%arg0: i32, %arg1: memref<1x4x1158xf32, #tpu.memory_space<vmem>>, %arg2: memref<16x36xf32, #tpu.memory_space<vmem>>, %arg3: memref<16x1xf32, #tpu.memory_space<vmem>>, %arg4: memref<1x8x1088xf32, #tpu.memory_space<vmem>>) attributes {dimension_semantics = [#tpu.dimension_semantics<parallel>], iteration_bounds = array<i64: 2>, scalar_prefetch = 0 : i64, scratch_operands = 0 : i64, tpu.core_type = #tpu.core_type<tc>, window_params = [{transform_indices = @transform_0, window_bounds = array<i64: 1, 4, 1158>}, {pipeline_mode = #tpu.pipeline_mode<synchronous>, transform_indices = @transform_1, window_bounds = array<i64: 16, 36>}, {pipeline_mode = #tpu.pipeline_mode<synchronous>, transform_indices = @transform_2, window_bounds = array<i64: 16, 1>}, {transform_indices = @transform_3, window_bounds = array<i64: 1, 8, 1088>}]} {
    %c0 = arith.constant 0 : index
    %c0_0 = arith.constant 0 : index
    %c0_1 = arith.constant 0 : index
    %0 = vector.load %arg1[%c0, %c0_0, %c0_1] : memref<1x4x1158xf32, #tpu.memory_space<vmem>>, vector<1x4x1158xf32>
    %1 = vector.shape_cast %0 : vector<1x4x1158xf32> to vector<4x1158xf32>
    %2 = vector.extract_strided_slice %1 {offsets = [0, 0], sizes = [4, 1088], strides = [1, 1]} : vector<4x1158xf32> to vector<4x1088xf32>
    %3 = vector.extract_strided_slice %1 {offsets = [0, 1], sizes = [4, 1088], strides = [1, 1]} : vector<4x1158xf32> to vector<4x1088xf32>
    %4 = vector.extract_strided_slice %1 {offsets = [0, 2], sizes = [4, 1088], strides = [1, 1]} : vector<4x1158xf32> to vector<4x1088xf32>
    %5 = vector.extract_strided_slice %1 {offsets = [0, 34], sizes = [4, 1088], strides = [1, 1]} : vector<4x1158xf32> to vector<4x1088xf32>
    %6 = vector.extract_strided_slice %1 {offsets = [0, 35], sizes = [4, 1088], strides = [1, 1]} : vector<4x1158xf32> to vector<4x1088xf32>
    %7 = vector.extract_strided_slice %1 {offsets = [0, 36], sizes = [4, 1088], strides = [1, 1]} : vector<4x1158xf32> to vector<4x1088xf32>
    %8 = vector.extract_strided_slice %1 {offsets = [0, 68], sizes = [4, 1088], strides = [1, 1]} : vector<4x1158xf32> to vector<4x1088xf32>
    %9 = vector.extract_strided_slice %1 {offsets = [0, 69], sizes = [4, 1088], strides = [1, 1]} : vector<4x1158xf32> to vector<4x1088xf32>
    %10 = vector.extract_strided_slice %1 {offsets = [0, 70], sizes = [4, 1088], strides = [1, 1]} : vector<4x1158xf32> to vector<4x1088xf32>
    %11 = tpu.concatenate %2, %3, %4, %5, %6, %7, %8, %9, %10 in 0 : vector<4x1088xf32>, vector<4x1088xf32>, vector<4x1088xf32>, vector<4x1088xf32>, vector<4x1088xf32>, vector<4x1088xf32>, vector<4x1088xf32>, vector<4x1088xf32>, vector<4x1088xf32> -> vector<36x1088xf32>
    %c0_2 = arith.constant 0 : index
    %c0_3 = arith.constant 0 : index
    %12 = vector.load %arg2[%c0_2, %c0_3] : memref<16x36xf32, #tpu.memory_space<vmem>>, vector<16x36xf32>
    %cst = arith.constant dense<0.000000e+00> : vector<16x1088xf32>
    %13 = tpu.matmul %12, %11, %cst {dimension_numbers = #tpu.dot_dimension_numbers<[1], [0], [0], [1], [0, 0, 1, 1], [], []>} : vector<16x36xf32>, vector<36x1088xf32>, vector<16x1088xf32> -> vector<16x1088xf32>
    %c0_4 = arith.constant 0 : index
    %c0_5 = arith.constant 0 : index
    %14 = vector.load %arg3[%c0_4, %c0_5] : memref<16x1xf32, #tpu.memory_space<vmem>>, vector<16x1xf32>
    %15 = vector.broadcast %14 : vector<16x1xf32> to vector<16x1088xf32>
    %16 = arith.addf %13, %15 : vector<16x1088xf32>
    %17 = vector.extract_strided_slice %16 {offsets = [0, 0], sizes = [8, 1088], strides = [1, 1]} : vector<16x1088xf32> to vector<8x1088xf32>
    %18 = vector.extract_strided_slice %16 {offsets = [8, 0], sizes = [8, 1088], strides = [1, 1]} : vector<16x1088xf32> to vector<8x1088xf32>
    %cst_6 = arith.constant 0.000000e+00 : f32
    %19 = vector.broadcast %cst_6 : f32 to vector<8x1088xf32>
    %20 = arith.cmpf ogt, %17, %19 : vector<8x1088xf32>
    %cst_7 = arith.constant 2.000000e-01 : f32
    %21 = vector.broadcast %cst_7 : f32 to vector<8x1088xf32>
    %22 = arith.mulf %21, %17 : vector<8x1088xf32>
    %23 = arith.select %20, %17, %22 : vector<8x1088xi1>, vector<8x1088xf32>
    %24 = arith.negf %18 : vector<8x1088xf32>
    %25 = math.exp %24 : vector<8x1088xf32>
    %cst_8 = arith.constant 1.000000e+00 : f32
    %26 = vector.broadcast %cst_8 : f32 to vector<8x1088xf32>
    %27 = arith.addf %26, %25 : vector<8x1088xf32>
    %28 = arith.divf %26, %27 : vector<8x1088xf32>
    %29 = arith.mulf %23, %28 : vector<8x1088xf32>
    %c0_9 = arith.constant 0 : index
    %c0_10 = arith.constant 0 : index
    %c0_11 = arith.constant 0 : index
    %30 = vector.load %arg4[%c0_9, %c0_10, %c0_11] : memref<1x8x1088xf32, #tpu.memory_space<vmem>>, vector<1x8x1088xf32>
    %31 = vector.shape_cast %30 : vector<1x8x1088xf32> to vector<8x1088xf32>
    %32 = vector.shape_cast %29 : vector<8x1088xf32> to vector<1x8x1088xf32>
    tpu.vector_store %arg4[%c0_9, %c0_10, %c0_11], %32 {strides = array<i32>} : memref<1x8x1088xf32, #tpu.memory_space<vmem>>, vector<1x8x1088xf32>,
    return
  }
  func.func @transform_0(%arg0: i32) -> (i32, i32, i32) {
    %c0_i32 = arith.constant 0 : i32
    %c0_i32_0 = arith.constant 0 : i32
    %c0_i32_1 = arith.constant 0 : i32
    return %arg0, %c0_i32, %c0_i32_0 : i32, i32, i32
  }
  func.func @transform_1(%arg0: i32) -> (i32, i32) {
    %c0_i32 = arith.constant 0 : i32
    %c0_i32_0 = arith.constant 0 : i32
    %c0_i32_1 = arith.constant 0 : i32
    return %c0_i32, %c0_i32_0 : i32, i32
  }
  func.func @transform_2(%arg0: i32) -> (i32, i32) {
    %c0_i32 = arith.constant 0 : i32
    %c0_i32_0 = arith.constant 0 : i32
    %c0_i32_1 = arith.constant 0 : i32
    return %c0_i32, %c0_i32_0 : i32, i32
  }
  func.func @transform_3(%arg0: i32) -> (i32, i32, i32) {
    %c0_i32 = arith.constant 0 : i32
    %c0_i32_0 = arith.constant 0 : i32
    %c0_i32_1 = arith.constant 0 : i32
    return %arg0, %c0_i32, %c0_i32_0 : i32, i32, i32
  }
}

</mosaic_0001>

<bundles_post_ra>
// kernel: tpu_custom_call.1
= control target key start
LH: loop header
LB: loop body
LE: loop exit
PB: predicated region body
PF: predicated region fallthrough
CT: control target
= control target key end

     0   :  { %8 = vsyncpa [#allocation3], 0  ;;  %s1997_s0 = inlined_call_operand.hbm [shape: f32[2,4,1158], index: 0, kind: input, shape index: {}]   ;;  %s1998_s1 = inlined_call_operand.vmem [shape: f32[16,36], index: 1, kind: input, shape index: {}]   ;;  %s1999_s2 = inlined_call_operand.vmem [shape: f32[16,1], index: 2, kind: input, shape index: {}]   ;;  %s2000_s3 = inlined_call_operand.hbm [shape: f32[2,8,1088], index: 3, kind: output, shape index: {}]  }
   0x1   :  { %10 = vsyncpa [#allocation3 + $0x1], 0 }
   0x2   :  { %11 = vsyncpa [#allocation4], 0 }
   0x3   :  { %13 = vsyncpa [#allocation4 + $0x1], 0  ;;  %s1434_s12 = smov 0   ;;  %s1436_s13 = smov 0  }
   0x4   :  { %s1438_s14 = smov 0   ;;  %s1440_s15 = smov 0  }
   0x5 LB: > { %s1455_s16 = sadd.s32 4294967295, %s1400_s15   ;;  %s1143_s17 = sadd.s32 4294967294, %s1400_s15   ;;  %s1400_s15 = sphi %s1440_s15, %s2016_s15   ;;  %s1396_s14 = sphi %s1438_s14, %s2015_s14   ;;  %s1392_s13 = sphi %s1436_s13, %s2014_s13   ;;  %s1388_s12 = sphi %s1434_s12, %s2013_s12  }
   0x6   : > { %s1459_s18 = sadd.s32 1, %s1400_s15   ;;  %s26_s19 = sadd.s32 1, %s1396_s14 }
   0x7   : > { %s23_s20 = ssub.s32 %s1400_s15, %s1459_s18  ;;  %p33_p0 = scmp.ne.s32.totalorder %s1396_s14, %s1392_s13 }
   0x8   : > { %p24_p1 = scmp.eq.s32.totalorder %s23_s20, 0  ;;  %p34_p2 = scmp.eq.s32.totalorder %s1400_s15, 0 }
   0x9   : > { %p39_p3 = scmp.ne.s32.totalorder %s1392_s13, %s1388_s12  ;;  %p40_p4 = scmp.eq.s32.totalorder %s1455_s16, 0 }
   0xa   : > { %s1471_s21 = scalar_select %p24_p1, %s1396_s14, %s26_s19  }
   0xb   : > { %p35_p5 = por %p34_p2, %p33_p0  ;;  %p1473_p6 = por %p40_p4, %p39_p3 }
   0xc   : > { %p105_p7 = scmp.eq.s32.totalorder %s1455_s16, 1  ;;  %p111_p8 = scmp.eq.s32.totalorder %s1143_s17, 1 }
   0xd   : > { %s2003_s22 = scalar_select %p1473_p6, 1, 0 }
   0xe   : > { %p1216_p10 = scmp.lt.s32.totalorder %s1400_s15, 2  ;;  %p1480_p11 = por %p105_p7, %p33_p0 }
   0xf   : > { %p1484_p12 = por %p111_p8, %p39_p3  ;;  %s137_s25 = sand.u32 1, %s1396_s14  }
  0x10   : > { %s2004_s23 = scalar_select %p1480_p11, 1, 0 }
  0x11   : > { %s2005_s24 = scalar_select %p1484_p12, 1, 0 }
  0x12   : > { %s1200_s26 = smul.u32 640, %s1400_s15  ;;  %p1495_p13 = pnand %p1216_p10, %p35_p5 }
  0x13   : > { %s1199_s27 = smul.u32 40, %s137_s25  ;;  %s138_s7 = scalar_lea.sflag [#allocation3], %s137_s25 }
  0x14   : > { %s1493_s30 = scalar_lea.hbm %s1997_s0, %s1200_s26  ;;  %p1310_p3 = pneg %p1495_p13 }
  0x15   : > { %s141_s5 = scalar_lea.vmem [#allocation2], %s1199_s27  ;;  %s1308_s8 = scalar_lea.hbm %s1493_s30, 640 }
  0x16   : > { %s149_s6 = sshll.u32 %s141_s5, 4  ;;  %p1309_p2 = scmp.ne.s32.totalorder %s1493_s30, %s1308_s8  ;;  %s150_s6 = int_to_ptr.vmem [resolvable:$true] %s149_s6 }
  0x17   : > { %s1313_s11 = scalar_lea.hbm %s1997_s0, 1280  ;;  %p1314_p5 = scmp.lt.s32.totalorder %s1493_s30, %s1997_s0 }
  0x18   : > { %p1311_p4 = pnand %p1310_p3, %p1309_p2  ;;  %p1315_p8 = scmp.lt.s32.totalorder %s1313_s11, %s1308_s8 }
  0x1a   : > { %p1312_p7 = pneg %p1311_p4  ;;  %p1316_p10 = por %p1315_p8, %p1314_p5 }
  0x1c   : > { %p1317_p9 = pnand %p1316_p10, %p1312_p7 }
  0x1e   : > { %1320 = shalt.err (!%p1317_p9)
}
  0x1f   : > { %s1321_s20 = scalar_lea.vmem %s150_s6, 640  ;;  %s1402_s25 = smov [#allocation2]  }
  0x20   : > { %p1322_p0 = scmp.ne.s32.totalorder %s150_s6, %s1321_s20  ;;  %s1326_s26 = sshll.u32 %s1402_s25, 4  ;;  %s1327_s26 = int_to_ptr.vmem [resolvable:$false] %s1326_s26 }
  0x21   : > { %s1328_s27 = scalar_lea.vmem %s1327_s26, 1280  ;;  %p1329_p2 = scmp.lt.s32.totalorder %s150_s6, %s1327_s26 }
  0x22   : > { %p1324_p1 = pnand %p1322_p0, %p1310_p3  ;;  %p1330_p4 = scmp.lt.s32.totalorder %s1328_s27, %s1321_s20 }
  0x24   : > { %p1325_p12 = pneg %p1324_p1  ;;  %p1331_p11 = por %p1330_p4, %p1329_p2 }
  0x26   : > { %p1332_p6 = pnand %p1331_p11, %p1325_p12 }
  0x28   : > { %1335 = shalt.err (!%p1332_p6)
}
  0x29   : > { %1211 = dma.hbm_to_vmem [thread:$0]  (!%p1495_p13), %s1493_s30, 640, %s150_s6, %s138_s7  }
  0x2a   : > { %p2007_p9 = scmp.lt.s32.totalorder %s1400_s15, 3  ;;  %p2008_p7 = scmp.ge.s32.totalorder %s1400_s15, 1 }
  0x2c   : > { %p155_p5 = pnand %p2008_p7, %p2007_p9 }
  0x2d   : > { %s1520_s28 = sand.u32 (!%p155_p5), 1, %s1392_s13   ;;  %p2009_p6 = scmp.ne.s32.totalorder (!%p155_p5), %s2003_s22, 0 }
  0x2e   : > { %158 = sbr.rel (%p155_p5) target bundleno = 568 (0x238), region = 32  ;;  %s161_s5 = scalar_lea.sflag (!%p155_p5), [#allocation3], %s1520_s28 }
  0x2f   : > { %s1201_s29 = smul.u32 (!%p155_p5), 40, %s1520_s28 }
  0x31   : > { %s1524_s8 = scalar_lea.vmem (!%p155_p5), [#allocation2], %s1201_s29 }
  0x33   : > { %1379 = dma.done.wait (%p2009_p6), %s161_s5, 640  }
  0x34   : > { %1381 = vsyncadd (%p2009_p6), %s161_s5, 4294966656  ;;  %v1531_v0 = vld [vmem:[%s1524_s8 + $0x8] sm:$0xff]  ;;  %v1534_v1 = vld [vmem:[%s1524_s8] sm:$0xff]  ;;  %s1403_s30 = smov 60   ;;  %s1404_s4 = smov 58   ;;  %v1411_v8 = vmov 0.0  }
  0x35   : > { %395 = vrot.lane.b32.xlu1 %v1531_v0, %s1403_s30  ;;  %473 = vrot.lane.b32.xlu0 %v1531_v0, %s1404_s4  ;;  %v1542_v2 = vcombine.high %v1534_v1, %v1534_v1  ;;  %s1405_s22 = smov 59   ;;  %v206_v3 = vcombine.low %v1531_v0, %v1531_v0  ;;  %v205_v4 = vcombine.low %v1534_v1, %v1534_v1  ;;  %s1406_s6 = smov 93   ;;  %v1577_v6 = vld [vmem:[%s1524_s8 + $0x10] sm:$0xff]  ;;  %v1625_v10 = vld [vmem:[%s1524_s8 + $0x18] sm:$0xff]  ;;  %vm489_vm0 = vcmask 474112  }
  0x36   : > { %s1407_s7 = smov 92   ;;  %v1571_v5 = vcombine.high %v1531_v0, %v1531_v0  ;;  %s1408_s9 = smov 126   ;;  %v207_v7 = vcombine.low %v1577_v6, %v1577_v6  ;;  %639 = vmatprep.mubr.f32.mxu0 %v1411_v8  ;;  %716 = vmatprep.mubr.f32.mxu1 %v1411_v8  ;;  %v1622_v9 = vcombine.high %v1577_v6, %v1577_v6  ;;  %v1655_v13 = vld [vmem:[%s1524_s8 + $0x20] sm:$0xff]  ;;  %vm499_vm1 = vcmask 1043456  }
  0x37   : > { %s1409_s10 = smov 94   ;;  %s1410_s11 = smov 127   ;;  %v208_v11 = vcombine.low %v1625_v10, %v1625_v10  ;;  %v1652_v12 = vcombine.high %v1625_v10, %v1625_v10  ;;  %v209_v14 = vcombine.low %v1655_v13, %v1655_v13  ;;  %vm450_vm2 = vcmask 482304   ;;  %v539_v49 = vld [vmem:[%s1999_s2 + $0x8] sm:$0xff]  ;;  %v538_v52 = vld [vmem:[%s1999_s2] sm:$0xff] }
  0x38   : > { %vm411_vm3 = vcmask 490496   ;;  %vm336_vm4 = vcmask 760832   ;;  %vm372_vm5 = vcmask 752640   ;;  %v390_v35 = vcombine.high %v1655_v13, %v1655_v13  ;;  %s1202_s8 = smul.u32 72, %s1520_s28  ;;  %p2010_p12 = scmp.ne.s32.totalorder %s2004_s23, 0 }
  0x39   : > { %432 = vrot.lane.b32.xlu0 %v1534_v1, %s1405_s22  ;;  %393 = vrot.lane.b32.xlu1 %v1542_v2, %s1403_s30  ;;  %v1412_v48 = vmov 0   ;;  %vm264_vm6 = vcmask 1031168   ;;  %vm300_vm7 = vcmask 769024   ;;  %vm228_vm8 = vcmask 1039360   ;;  %s1413_s17 = smov [#allocation5]  }
  0x3a   : > { %1260 = vset.pattern.permute.xlu1 %v1412_v48  ;;  %1261 = vset.pattern.permute.xlu0 %v1412_v48  ;;  %vm550_vm9 = vcmask 293888  }
  0x3d   : > { %434 = vrot.lane.b32.xlu1 %v206_v3, %s1405_s22  ;;  %471 = vrot.lane.b32.xlu0 %v1542_v2, %s1404_s4 }
  0x41   : > { %391 = vrot.lane.b32.xlu1 %v1534_v1, %s1403_s30  ;;  %469 = vrot.lane.b32.xlu0 %v1534_v1, %s1404_s4 }
  0x45   : > { %320 = vrot.lane.b32.xlu1 %v1542_v2, %s1406_s6  ;;  %430 = vrot.lane.b32.xlu0 %v205_v4, %s1405_s22 }
  0x49   : > { %356 = vrot.lane.b32.xlu1 %v1534_v1, %s1407_s7  ;;  %322 = vrot.lane.b32.xlu0 %v1531_v0, %s1406_s6 }
  0x4d   : > { %318 = vrot.lane.b32.xlu1 %v1534_v1, %s1406_s6  ;;  %358 = vrot.lane.b32.xlu0 %v206_v3, %s1407_s7 }
  0x51   : > { %475 = vrot.lane.b32.xlu1 %v1571_v5, %s1404_s4  ;;  %354 = vrot.lane.b32.xlu0 %v205_v4, %s1407_s7 }
  0x55   : > { %248 = vrot.lane.b32.xlu1 %v1542_v2, %s1408_s9  ;;  %477 = vrot.lane.b32.xlu0 %v1577_v6, %s1404_s4 }
  0x59   : > { %284 = vrot.lane.b32.xlu1 %v1534_v1, %s1409_s10  ;;  %250 = vrot.lane.b32.xlu0 %v1531_v0, %s1408_s9 }
  0x5d   : > { %397 = vrot.lane.b32.xlu1 %v1571_v5, %s1403_s30  ;;  %286 = vrot.lane.b32.xlu0 %v206_v3, %s1409_s10 }
  0x61   : > { %436 = vrot.lane.b32.xlu1 %v1531_v0, %s1405_s22  ;;  %399 = vrot.lane.b32.xlu0 %v1577_v6, %s1403_s30 }
  0x65   : > { %246 = vrot.lane.b32.xlu1 %v1534_v1, %s1408_s9  ;;  %438 = vrot.lane.b32.xlu0 %v207_v7, %s1405_s22 }
  0x69   : > { %212 = vrot.lane.b32.xlu1 %v1534_v1, %s1410_s11  ;;  %282 = vrot.lane.b32.xlu0 %v205_v4, %s1409_s10 }
  0x6d   : > { %324 = vrot.lane.b32.xlu1 %v1571_v5, %s1406_s6  ;;  %214 = vrot.lane.b32.xlu0 %v206_v3, %s1410_s11 }
  0x71   : > { %360 = vrot.lane.b32.xlu1 %v1531_v0, %s1407_s7  ;;  %326 = vrot.lane.b32.xlu0 %v1577_v6, %s1406_s6 }
  0x75   : > { %210 = vrot.lane.b32.xlu1 %v205_v4, %s1410_s11  ;;  %362 = vrot.lane.b32.xlu0 %v207_v7, %s1407_s7 }
  0x79   : > { %254 = vrot.lane.b32.xlu1 %v1577_v6, %s1408_s9  ;;  %252 = vrot.lane.b32.xlu0 %v1571_v5, %s1408_s9 }
  0x7d   : > { %290 = vrot.lane.b32.xlu1 %v207_v7, %s1409_s10  ;;  %288 = vrot.lane.b32.xlu0 %v1531_v0, %s1409_s10 }
  0x81   : > { %481 = vrot.lane.b32.xlu1 %v1625_v10, %s1404_s4  ;;  %479 = vrot.lane.b32.xlu0 %v1622_v9, %s1404_s4 }
  0x85   : > { %218 = vrot.lane.b32.xlu1 %v207_v7, %s1410_s11  ;;  %216 = vrot.lane.b32.xlu0 %v1531_v0, %s1410_s11 }
  0x89   : > { %403 = vrot.lane.b32.xlu1 %v1625_v10, %s1403_s30  ;;  %401 = vrot.lane.b32.xlu0 %v1622_v9, %s1403_s30 }
  0x8d   : > { %442 = vrot.lane.b32.xlu1 %v208_v11, %s1405_s22  ;;  %440 = vrot.lane.b32.xlu0 %v1577_v6, %s1405_s22 }
  0x91   : > { %330 = vrot.lane.b32.xlu1 %v1625_v10, %s1406_s6  ;;  %328 = vrot.lane.b32.xlu0 %v1622_v9, %s1406_s6 }
  0x95   : > { %366 = vrot.lane.b32.xlu1 %v208_v11, %s1407_s7  ;;  %364 = vrot.lane.b32.xlu0 %v1577_v6, %s1407_s7 }
  0x99   : > { %485 = vrot.lane.b32.xlu1 %v1655_v13, %s1404_s4  ;;  %483 = vrot.lane.b32.xlu0 %v1652_v12, %s1404_s4 }
  0x9d   : > { %258 = vrot.lane.b32.xlu1 %v1625_v10, %s1408_s9  ;;  %256 = vrot.lane.b32.xlu0 %v1622_v9, %s1408_s9 }
  0xa1   : > { %294 = vrot.lane.b32.xlu1 %v208_v11, %s1409_s10  ;;  %292 = vrot.lane.b32.xlu0 %v1577_v6, %s1409_s10 }
  0xa5   : > { %407 = vrot.lane.b32.xlu1 %v1655_v13, %s1403_s30  ;;  %405 = vrot.lane.b32.xlu0 %v1652_v12, %s1403_s30 }
  0xa7   : > { %v1674_v15 = vpop.permute.xlu1 %395  ;;  %v1676_v16 = vpop.permute.xlu0 %473 }
  0xa9   : > { %446 = vrot.lane.b32.xlu1 %v209_v14, %s1405_s22  ;;  %444 = vrot.lane.b32.xlu0 %v1625_v10, %s1405_s22 }
  0xab   : > { %v433_v17 = vpop.permute.xlu0 %432  ;;  %v394_v18 = vpop.permute.xlu1 %393 }
  0xac   : > { %v413_v26 = vsel %vm411_vm3, %v394_v18, %v1674_v15 }
  0xad   : > { %222 = vrot.lane.b32.xlu1 %v208_v11, %s1410_s11  ;;  %220 = vrot.lane.b32.xlu0 %v1577_v6, %s1410_s11 }
  0xaf   : > { %v1684_v19 = vpop.permute.xlu1 %434  ;;  %v472_v20 = vpop.permute.xlu0 %471 }
  0xb0   : > { %v491_v21 = vsel %vm489_vm0, %v472_v20, %v1676_v16  ;;  %v452_v22 = vsel %vm450_vm2, %v433_v17, %v1684_v19 }
  0xb1   : > { %334 = vrot.lane.b32.xlu1 %v1655_v13, %s1406_s6  ;;  %332 = vrot.lane.b32.xlu0 %v1652_v12, %s1406_s6  ;;  %v528_v27 = vsel %vm499_vm1, %v413_v26, %v452_v22 }
  0xb2   : > { %1148 = vmatprep.subr.msk.mxu0 %vm499_vm1, %v491_v21 }
  0xb3   : > { %v392_v23 = vpop.permute.xlu1 %391  ;;  %v470_v24 = vpop.permute.xlu0 %469 }
  0xb4   : > { %v490_v25 = vsel %vm489_vm0, %v470_v24, %v472_v20  ;;  %v412_v30 = vsel %vm411_vm3, %v392_v23, %v394_v18 }
  0xb5   : > { %370 = vrot.lane.b32.xlu1 %v209_v14, %s1407_s7  ;;  %368 = vrot.lane.b32.xlu0 %v1625_v10, %s1407_s7 }
  0xb6   : > { %1149 = vmatpush1.msk.msra.mxu0 %vm499_vm1, %v490_v25 }
  0xb7   : > { %599 = vmatprep.subr.mxu0 %v528_v27  ;;  %v321_v28 = vpop.permute.xlu1 %320  ;;  %v431_v29 = vpop.permute.xlu0 %430 }
  0xb8   : > { %v451_v31 = vsel %vm450_vm2, %v431_v29, %v433_v17 }
  0xb9   : > { %262 = vrot.lane.b32.xlu1 %v1655_v13, %s1408_s9  ;;  %260 = vrot.lane.b32.xlu0 %v1652_v12, %s1408_s9  ;;  %v527_v32 = vsel %vm499_vm1, %v412_v30, %v451_v31 }
  0xba   : > { %600 = vmatpush1.msra.mxu0 %v527_v32 }
  0xbb   : > { %v357_v33 = vpop.permute.xlu1 %356  ;;  %v1710_v34 = vpop.permute.xlu0 %322 }
  0xbc   : > { %v338_v38 = vsel %vm336_vm4, %v321_v28, %v1710_v34 }
  0xbd   : > { %298 = vrot.lane.b32.xlu1 %v209_v14, %s1409_s10  ;;  %296 = vrot.lane.b32.xlu0 %v1625_v10, %s1409_s10  ;;  %s1059_s10 = scalar_lea.sflag [#allocation4], %s1520_s28 }
  0xbf   : > { %v319_v36 = vpop.permute.xlu1 %318  ;;  %v1717_v37 = vpop.permute.xlu0 %358 }
  0xc0   : > { %v374_v39 = vsel %vm372_vm5, %v357_v33, %v1717_v37  ;;  %v337_v43 = vsel %vm336_vm4, %v319_v36, %v321_v28 }
  0xc1   : > { %224 = vrot.lane.b32.xlu1 %v1625_v10, %s1410_s11  ;;  %487 = vrot.lane.b32.xlu0 %v390_v35, %s1404_s4  ;;  %v519_v40 = vsel %vm499_vm1, %v338_v38, %v374_v39  ;;  %s1203_s4 = smul.u32 1152, %s1455_s16  ;;  %s1340_s16 = sshll.u32 %s1413_s17, 4  ;;  %s1341_s16 = int_to_ptr.vmem [resolvable:$false] %s1340_s16 }
  0xc2   : > { %601 = vmatprep.subr.mxu0 %v519_v40  ;;  %s1342_s19 = scalar_lea.vmem %s1341_s16, 2304 }
  0xc3   : > { %v476_v41 = vpop.permute.xlu1 %475  ;;  %v355_v42 = vpop.permute.xlu0 %354  ;;  %s1071_s9 = scalar_lea.hbm %s2000_s3, %s1203_s4 }
  0xc4   : > { %v373_v44 = vsel %vm372_vm5, %v355_v42, %v357_v33  ;;  %v492_v51 = vsel %vm489_vm0, %v1676_v16, %v476_v41 }
  0xc5   : > { %409 = vrot.lane.b32.xlu1 %v390_v35, %s1403_s30  ;;  %226 = vrot.lane.b32.xlu0 %v209_v14, %s1410_s11  ;;  %v518_v45 = vsel %vm499_vm1, %v337_v43, %v373_v44  ;;  %s1938_s30 = scalar_lea.vmem [#allocation5], %s1202_s8 }
  0xc6   : > { %602 = vmatpush1.msra.mxu0 %v518_v45 }
  0xc7   : > { %v249_v46 = vpop.permute.xlu1 %248  ;;  %v1732_v47 = vpop.permute.xlu0 %477 }
  0xc8   : > { %v493_v50 = vsel %vm489_vm0, %v476_v41, %v1732_v47 }
  0xc9   : > { %448 = vrot.lane.b32.xlu0 %v1655_v13, %s1405_s22  ;;  %1152 = vmatprep.subr.msk.mxu1 %vm499_vm1, %v493_v50  ;;  %s1073_s22 = sshll.u32 %s1938_s30, 4  ;;  %s1074_s22 = int_to_ptr.vmem [resolvable:$true] %s1073_s22 }
  0xca   : > { %1153 = vmatpush1.msk.msra.mxu1 %vm499_vm1, %v492_v51  ;;  %547 = vperm.xlu1 %1260, %v539_v49   ;;  %s1336_s11 = scalar_lea.vmem %s1074_s22, 1152  ;;  %p1343_p1 = scmp.lt.s32.totalorder %s1074_s22, %s1341_s16 }
  0xcb   : > { %v285_v53 = vpop.permute.xlu1 %284  ;;  %v251_v54 = vpop.permute.xlu0 %250  ;;  %p1337_p11 = scmp.ne.s32.totalorder %s1074_s22, %s1336_s11  ;;  %p1344_p3 = scmp.lt.s32.totalorder %s1342_s19, %s1336_s11 }
  0xcc   : > { %v266_v57 = vsel %vm264_vm6, %v249_v46, %v251_v54 }
  0xcd   : > { %542 = vperm.xlu0 %1261, %v538_v52   ;;  %p1338_p13 = pnand %p1337_p11, %p2010_p12  ;;  %p1345_p8 = por %p1344_p3, %p1343_p1 }
  0xcf   : > { %v398_v55 = vpop.permute.xlu1 %397  ;;  %v287_v56 = vpop.permute.xlu0 %286  ;;  %p1339_p0 = pneg %p1338_p13 }
  0xd0   : > { %v302_v58 = vsel %vm300_vm7, %v285_v53, %v287_v56  ;;  %v414_v11 = vsel %vm411_vm3, %v1674_v15, %v398_v55 }
  0xd1   : > { %v510_v59 = vsel %vm499_vm1, %v266_v57, %v302_v58  ;;  %p1346_p10 = pnand %p1345_p8, %p1339_p0 }
  0xd2   : > { %603 = vmatprep.subr.mxu0 %v510_v59 }
  0xd3   : > { %v437_v60 = vpop.permute.xlu1 %436  ;;  %v1751_v61 = vpop.permute.xlu0 %399 }
  0xd4   : > { %v453_v62 = vsel %vm450_vm2, %v1684_v19, %v437_v60  ;;  %v415_v4 = vsel %vm411_vm3, %v398_v55, %v1751_v61 }
  0xd5   : > { %v529_v16 = vsel %vm499_vm1, %v414_v11, %v453_v62 }
  0xd7   : > { %v247_v63 = vpop.permute.xlu1 %246  ;;  %v1755_v3 = vpop.permute.xlu0 %438 }
  0xd8   : > { %v454_v7 = vsel %vm450_vm2, %v437_v60, %v1755_v3  ;;  %v265_v19 = vsel %vm264_vm6, %v247_v63, %v249_v46 }
  0xd9   : > { %v530_v14 = vsel %vm499_vm1, %v415_v4, %v454_v7 }
  0xda   : > { %676 = vmatprep.subr.mxu1 %v530_v14 }
  0xdb   : > { %v213_v17 = vpop.permute.xlu1 %212  ;;  %677 = vmatpush1.msra.mxu1 %v529_v16  ;;  %v283_v18 = vpop.permute.xlu0 %282 }
  0xdc   : > { %v301_v20 = vsel %vm300_vm7, %v283_v18, %v285_v53 }
  0xdd   : > { %v509_v21 = vsel %vm499_vm1, %v265_v19, %v301_v20 }
  0xde   : > { %604 = vmatpush1.msra.mxu0 %v509_v21 }
  0xdf   : > { %v325_v22 = vpop.permute.xlu1 %324  ;;  %v215_v23 = vpop.permute.xlu0 %214 }
  0xe0   : > { %v230_v15 = vsel %vm228_vm8, %v213_v17, %v215_v23  ;;  %v339_v33 = vsel %vm336_vm4, %v1710_v34, %v325_v22  ;;  %v1801_v34 = vld [vmem:[%s1998_s1 + $0x8] sm:$0xff] }
  0xe1   : > { %v501_v24 = vsel %vm499_vm1, %v1542_v2, %v230_v15  ;;  %v1785_v2 = vld [vmem:[%s1998_s1] sm:$0xff] }
  0xe2   : > { %605 = vmatprep.subr.mxu0 %v501_v24 }
  0xe3   : > { %v361_v25 = vpop.permute.xlu1 %360  ;;  %v1771_v26 = vpop.permute.xlu0 %326 }
  0xe4   : > { %v375_v27 = vsel %vm372_vm5, %v1717_v37, %v361_v25  ;;  %v340_v30 = vsel %vm336_vm4, %v325_v22, %v1771_v26 }
  0xe5   : > { %v520_v37 = vsel %vm499_vm1, %v339_v33, %v375_v27 }
  0xe7   : > { %v211_v28 = vpop.permute.xlu1 %210  ;;  %v1775_v29 = vpop.permute.xlu0 %362 }
  0xe8   : > { %v229_v31 = vsel %vm228_vm8, %v211_v28, %v213_v17  ;;  %v376_v32 = vsel %vm372_vm5, %v361_v25, %v1775_v29 }
  0xe9   : > { %v500_v35 = vsel %vm499_vm1, %v1534_v1, %v229_v31  ;;  %v521_v36 = vsel %vm499_vm1, %v340_v30, %v376_v32 }
  0xea   : > { %606 = vmatpush1.msra.mxu0 %v500_v35  ;;  %678 = vmatprep.subr.mxu1 %v521_v36 }
  0xeb   : > { %v1793_v38 = vpop.permute.xlu1 %254  ;;  %679 = vmatpush1.msra.mxu1 %v520_v37  ;;  %v253_v39 = vpop.permute.xlu0 %252  ;;  %1150 = vmatmul.mubr.msk.f32.vlgmr.msra.gmra.mxu0 %vm550_vm9, %v1785_v2 }
  0xec   : > { %645 = vmatprep.mubr.f32.mxu0 %v1411_v8  ;;  %v267_v41 = vsel %vm264_vm6, %v251_v54, %v253_v39  ;;  %v268_v42 = vsel %vm264_vm6, %v253_v39, %v1793_v38 }
  0xef   : > { %v1803_v1 = vpop.permute.xlu1 %290  ;;  %v289_v40 = vpop.permute.xlu0 %288  ;;  %1151 = vmatmul.mubr.msk.f32.gmra.mxu0 %vm550_vm9, %v1801_v34 }
  0xf0   : > { %v303_v43 = vsel %vm300_vm7, %v287_v56, %v289_v40  ;;  %v304_v44 = vsel %vm300_vm7, %v289_v40, %v1803_v1  ;;  %793 = vmatprep.mubr.f32.mxu0 %v1411_v8 }
  0xf1   : > { %v512_v45 = vsel %vm499_vm1, %v268_v42, %v304_v44  ;;  %v511_v46 = vsel %vm499_vm1, %v267_v41, %v303_v43 }
  0xf2   : > { %680 = vmatprep.subr.mxu1 %v512_v45 }
  0xf3   : > { %v482_v48 = vpop.permute.xlu1 %481  ;;  %681 = vmatpush1.msra.mxu1 %v511_v46  ;;  %v480_v49 = vpop.permute.xlu0 %479 }
  0xf4   : > { %v494_v50 = vsel %vm489_vm0, %v1732_v47, %v480_v49  ;;  %v495_v51 = vsel %vm489_vm0, %v480_v49, %v482_v48 }
  0xf5   : > { %1156 = vmatprep.subr.msk.mxu0 %vm499_vm1, %v495_v51 }
  0xf6   : > { %1157 = vmatpush1.msk.msra.mxu0 %vm499_vm1, %v494_v50 }
  0xf7   : > { %v1821_v52 = vpop.permute.xlu1 %218  ;;  %v217_v53 = vpop.permute.xlu0 %216 }
  0xf8   : > { %v231_v54 = vsel %vm228_vm8, %v215_v23, %v217_v53  ;;  %v232_v55 = vsel %vm228_vm8, %v217_v53, %v1821_v52 }
  0xf9   : > { %v503_v56 = vsel %vm499_vm1, %v1571_v5, %v232_v55  ;;  %v502_v47 = vsel %vm499_vm1, %v1531_v0, %v231_v54 }
  0xfa   : > { %682 = vmatprep.subr.mxu1 %v503_v56 }
  0xfb   : > { %v404_v57 = vpop.permute.xlu1 %403  ;;  %683 = vmatpush1.msra.mxu1 %v502_v47  ;;  %v402_v58 = vpop.permute.xlu0 %401 }
  0xfc   : > { %1154 = vmatmul.mubr.msk.f32.vlgmr.msra.gmra.mxu1 %vm550_vm9, %v1785_v2  ;;  %v416_v62 = vsel %vm411_vm3, %v1751_v61, %v402_v58  ;;  %v417_v63 = vsel %vm411_vm3, %v402_v58, %v404_v57 }
  0xfd   : > { %722 = vmatprep.mubr.f32.mxu1 %v1411_v8 }
  0xff   : > { %v443_v59 = vpop.permute.xlu1 %442  ;;  %v441_v60 = vpop.permute.xlu0 %440 }
 0x100   : > { %v455_v5 = vsel %vm450_vm2, %v1755_v3, %v441_v60  ;;  %v456_v0 = vsel %vm450_vm2, %v441_v60, %v443_v59  ;;  %1155 = vmatmul.mubr.msk.f32.gmra.mxu1 %vm550_vm9, %v1801_v34 }
 0x101   : > { %v532_v4 = vsel %vm499_vm1, %v417_v63, %v456_v0  ;;  %v531_v7 = vsel %vm499_vm1, %v416_v62, %v455_v5  ;;  %870 = vmatprep.mubr.f32.mxu1 %v1411_v8 }
 0x102   : > { %753 = vmatprep.subr.mxu0 %v532_v4 }
 0x103   : > { %v331_v11 = vpop.permute.xlu1 %330  ;;  %754 = vmatpush1.msra.mxu0 %v531_v7  ;;  %v329_v61 = vpop.permute.xlu0 %328 }
 0x104   : > { %v341_v3 = vsel %vm336_vm4, %v1771_v26, %v329_v61  ;;  %v342_v17 = vsel %vm336_vm4, %v329_v61, %v331_v11 }
 0x107   : > { %v367_v14 = vpop.permute.xlu1 %366  ;;  %v365_v16 = vpop.permute.xlu0 %364 }
 0x108   : > { %v377_v18 = vsel %vm372_vm5, %v1775_v29, %v365_v16  ;;  %v378_v19 = vsel %vm372_vm5, %v365_v16, %v367_v14 }
 0x109   : > { %v523_v20 = vsel %vm499_vm1, %v342_v17, %v378_v19  ;;  %v522_v21 = vsel %vm499_vm1, %v341_v3, %v377_v18 }
 0x10a   : > { %755 = vmatprep.subr.mxu0 %v523_v20 }
 0x10b   : > { %v1852_v22 = vpop.permute.xlu1 %485  ;;  %756 = vmatpush1.msra.mxu0 %v522_v21  ;;  %v484_v23 = vpop.permute.xlu0 %483 }
 0x10c   : > { %v496_v15 = vsel %vm489_vm0, %v482_v48, %v484_v23  ;;  %v497_v24 = vsel %vm489_vm0, %v484_v23, %v1852_v22 }
 0x10d   : > { %1160 = vmatprep.subr.msk.mxu1 %vm499_vm1, %v497_v24 }
 0x10e   : > { %1161 = vmatpush1.msk.msra.mxu1 %vm499_vm1, %v496_v15 }
 0x10f   : > { %v259_v25 = vpop.permute.xlu1 %258  ;;  %v257_v26 = vpop.permute.xlu0 %256 }
 0x110   : > { %v269_v29 = vsel %vm264_vm6, %v1793_v38, %v257_v26  ;;  %v270_v30 = vsel %vm264_vm6, %v257_v26, %v259_v25 }
 0x113   : > { %v295_v27 = vpop.permute.xlu1 %294  ;;  %v293_v28 = vpop.permute.xlu0 %292 }
 0x114   : > { %v305_v31 = vsel %vm300_vm7, %v1803_v1, %v293_v28  ;;  %v306_v32 = vsel %vm300_vm7, %v293_v28, %v295_v27 }
 0x115   : > { %v514_v33 = vsel %vm499_vm1, %v270_v30, %v306_v32  ;;  %v513_v35 = vsel %vm499_vm1, %v269_v29, %v305_v31 }
 0x116   : > { %757 = vmatprep.subr.mxu0 %v514_v33 }
 0x117   : > { %v1867_v36 = vpop.permute.xlu1 %407  ;;  %758 = vmatpush1.msra.mxu0 %v513_v35  ;;  %v406_v37 = vpop.permute.xlu0 %405 }
 0x118   : > { %v418_v38 = vsel %vm411_vm3, %v404_v57, %v406_v37  ;;  %v419_v41 = vsel %vm411_vm3, %v406_v37, %v1867_v36 }
 0x11b   : > { %v447_v39 = vpop.permute.xlu1 %446  ;;  %v445_v40 = vpop.permute.xlu0 %444 }
 0x11c   : > { %v457_v1 = vsel %vm450_vm2, %v443_v59, %v445_v40  ;;  %v458_v42 = vsel %vm450_vm2, %v445_v40, %v447_v39 }
 0x11d   : > { %v534_v43 = vsel %vm499_vm1, %v419_v41, %v458_v42  ;;  %v533_v44 = vsel %vm499_vm1, %v418_v38, %v457_v1 }
 0x11e   : > { %830 = vmatprep.subr.mxu1 %v534_v43 }
 0x11f   : > { %v223_v45 = vpop.permute.xlu1 %222  ;;  %831 = vmatpush1.msra.mxu1 %v533_v44  ;;  %v221_v46 = vpop.permute.xlu0 %220 }
 0x120   : > { %v233_v48 = vsel %vm228_vm8, %v1821_v52, %v221_v46  ;;  %v234_v49 = vsel %vm228_vm8, %v221_v46, %v223_v45 }
 0x121   : > { %v505_v50 = vsel %vm499_vm1, %v1622_v9, %v234_v49  ;;  %v504_v51 = vsel %vm499_vm1, %v1577_v6, %v233_v48 }
 0x122   : > { %759 = vmatprep.subr.mxu0 %v505_v50 }
 0x123   : > { %v335_v53 = vpop.permute.xlu1 %334  ;;  %760 = vmatpush1.msra.mxu0 %v504_v51  ;;  %v333_v54 = vpop.permute.xlu0 %332 }
 0x124   : > { %1158 = vmatmul.mubr.msk.f32.vlgmr.msra.gmra.mxu0 %vm550_vm9, %v1785_v2  ;;  %v343_v52 = vsel %vm336_vm4, %v331_v11, %v333_v54  ;;  %v344_v47 = vsel %vm336_vm4, %v333_v54, %v335_v53 }
 0x125   : > { %799 = vmatprep.mubr.f32.mxu0 %v1411_v8 }
 0x127   : > { %v371_v55 = vpop.permute.xlu1 %370  ;;  %v369_v56 = vpop.permute.xlu0 %368 }
 0x128   : > { %v379_v9 = vsel %vm372_vm5, %v367_v14, %v369_v56  ;;  %v380_v57 = vsel %vm372_vm5, %v369_v56, %v371_v55  ;;  %1159 = vmatmul.mubr.msk.f32.gmra.mxu0 %vm550_vm9, %v1801_v34 }
 0x129   : > { %v525_v6 = vsel %vm499_vm1, %v344_v47, %v380_v57  ;;  %v524_v58 = vsel %vm499_vm1, %v343_v52, %v379_v9  ;;  %1196 = vmatprep.mubr.msk.f32.mxu0 %vm550_vm9, %v1785_v2 }
 0x12a   : > { %832 = vmatprep.subr.mxu1 %v525_v6 }
 0x12b   : > { %v263_v59 = vpop.permute.xlu1 %262  ;;  %833 = vmatpush1.msra.mxu1 %v524_v58  ;;  %v261_v60 = vpop.permute.xlu0 %260 }
 0x12c   : > { %v271_v5 = vsel %vm264_vm6, %v259_v25, %v261_v60  ;;  %v272_v0 = vsel %vm264_vm6, %v261_v60, %v263_v59 }
 0x12f   : > { %v299_v62 = vpop.permute.xlu1 %298  ;;  %v297_v63 = vpop.permute.xlu0 %296 }
 0x130   : > { %v307_v4 = vsel %vm300_vm7, %v295_v27, %v297_v63  ;;  %v308_v7 = vsel %vm300_vm7, %v297_v63, %v299_v62 }
 0x131   : > { %v516_v11 = vsel %vm499_vm1, %v272_v0, %v308_v7  ;;  %v515_v61 = vsel %vm499_vm1, %v271_v5, %v307_v4 }
 0x132   : > { %834 = vmatprep.subr.mxu1 %v516_v11 }
 0x133   : > { %v225_v14 = vpop.permute.xlu1 %224  ;;  %835 = vmatpush1.msra.mxu1 %v515_v61  ;;  %v488_v16 = vpop.permute.xlu0 %487 }
 0x134   : > { %v498_v3 = vsel %vm489_vm0, %v1852_v22, %v488_v16  ;;  %v235_v17 = vsel %vm228_vm8, %v223_v45, %v225_v14 }
 0x135   : > { %1186 = vmatprep.subr.msk.mxu0 %vm499_vm1, %v498_v3  ;;  %v506_v23 = vsel %vm499_vm1, %v1625_v10, %v235_v17  ;;  %v517_v10 = vsel %vm499_vm1, %v263_v59, %v299_v62 }
 0x136   : > { %1187 = vmatpush3.msk.msra.mxu0 %vm499_vm1, %v498_v3 }
 0x137   : > { %v227_v18 = vpop.permute.xlu0 %226  ;;  %v410_v20 = vpop.permute.xlu1 %409 }
 0x138   : > { %v236_v19 = vsel %vm228_vm8, %v225_v14, %v227_v18  ;;  %v420_v22 = vsel %vm411_vm3, %v1867_v36, %v410_v20  ;;  %vm1056_vm3 = vcmask 523264  }
 0x139   : > { %v507_v21 = vsel %vm499_vm1, %v1652_v12, %v236_v19  ;;  %v526_v12 = vsel %vm499_vm1, %v335_v53, %v371_v55 }
 0x13a   : > { %836 = vmatprep.subr.mxu1 %v507_v21 }
 0x13b   : > { %837 = vmatpush1.msra.mxu1 %v506_v23  ;;  %v449_v15 = vpop.permute.xlu0 %448 }
 0x13c   : > { %v459_v24 = vsel %vm450_vm2, %v447_v39, %v449_v15  ;;  %1162 = vmatmul.mubr.msk.f32.vlgmr.msra.gmra.mxu1 %vm550_vm9, %v1785_v2  ;;  %v508_v2 = vsel %vm499_vm1, %v1655_v13, %v227_v18 }
 0x13d   : > { %v535_v25 = vsel %vm499_vm1, %v420_v22, %v459_v24  ;;  %876 = vmatprep.mubr.f32.mxu1 %v1411_v8 }
 0x13e   : > { %1188 = vmatprep.subr.mxu0 %v535_v25 }
 0x13f   : > { %1189 = vmatpush3.msra.mxu0 %v535_v25 }
 0x140   : > { %1163 = vmatmul.mubr.msk.f32.gmra.mxu1 %vm550_vm9, %v1801_v34  ;;  %1190 = vmatprep.subr.mxu0 %v526_v12 }
 0x141   : > { %1191 = vmatpush3.msra.mxu0 %v526_v12 }
 0x142   : > { %1192 = vmatprep.subr.mxu0 %v517_v10 }
 0x143   : > { %1193 = vmatpush3.msra.mxu0 %v517_v10 }
 0x144   : > { %1194 = vmatprep.subr.mxu0 %v508_v2 }
 0x145   : > { %1195 = vmatpush3.msra.mxu0 %v508_v2  ;;  %v1927_v27 = vpop.permute.xlu1 %547 }
 0x146   : > { %1197 = vmatmul.mubr.msk.f32.vlgmr.msra.gmra.mxu0 %vm550_vm9, %v1801_v34 }
 0x148   : > { %v1933_v43 = vpop.permute.xlu0 %542 }
 0x1ab   : > { %v641_v8 = vpop.f32.mrf.mxu0 }
 0x1ac   : > { %v642_v45 = vadd.f32 %v641_v8, %v1933_v43 }
 0x1ad   : > { %v643_v26 = vpop.f32.mrf.mxu0 }
 0x1ae   : > { %v644_v46 = vadd.f32 %v643_v26, %v1933_v43  ;;  %v967_v48 = vmul.f32 0.2, %v642_v45  ;;  %vm958_vm10 = vcmp.gt.f32.partialorder %v642_v45, 0.0 }
 0x1af   : > { %v647_v28 = vpop.f32.mrf.mxu0 }
 0x1b0   : > { %v648_v29 = vadd.f32 %v647_v28, %v1927_v27  ;;  %v968_v49 = vmul.f32 0.2, %v644_v46  ;;  %vm959_vm11 = vcmp.gt.f32.partialorder %v644_v46, 0.0  ;;  %v976_v50 = vsel %vm958_vm10, %v642_v45, %v967_v48 }
 0x1b1   : > { %v649_v30 = vpop.f32.mrf.mxu0 }
 0x1b2   : > { %v1167_v31 = vmul.f32 -1.442695, %v648_v29  ;;  %v650_v32 = vadd.f32 %v649_v30, %v1927_v27  ;;  %v977_v53 = vsel %vm959_vm11, %v644_v46, %v968_v49 }
 0x1b4   : > { %1272 = vpow2.f32 %v1167_v31  ;;  %v1168_v33 = vmul.f32 -1.442695, %v650_v32 }
 0x1b6   : > { %1274 = vpow2.f32 %v1168_v33 }
 0x1bc   : > { %v718_v13 = vpop.f32.mrf.mxu1 }
 0x1bd   : > { %v719_v6 = vadd.f32 %v718_v13, %v1933_v43 }
 0x1be   : > { %v720_v35 = vpop.f32.mrf.mxu1 }
 0x1bf   : > { %v721_v58 = vadd.f32 %v720_v35, %v1933_v43  ;;  %v969_v59 = vmul.f32 0.2, %v719_v6  ;;  %vm960_vm12 = vcmp.gt.f32.partialorder %v719_v6, 0.0 }
 0x1c0   : > { %v724_v36 = vpop.f32.mrf.mxu1 }
 0x1c1   : > { %v1273_v37 = vpop.eup %1272  ;;  %v725_v34 = vadd.f32 %v724_v36, %v1927_v27  ;;  %v970_v60 = vmul.f32 0.2, %v721_v58  ;;  %vm961_vm13 = vcmp.gt.f32.partialorder %v721_v58, 0.0  ;;  %v978_v62 = vsel %vm960_vm12, %v719_v6, %v969_v59 }
 0x1c2   : > { %v1012_v39 = vadd.f32 1.0, %v1273_v37  ;;  %v726_v40 = vpop.f32.mrf.mxu1 }
 0x1c3   : > { %v1275_v38 = vpop.eup %1274  ;;  %v1169_v41 = vmul.f32 -1.442695, %v725_v34  ;;  %v727_v1 = vadd.f32 %v726_v40, %v1927_v27  ;;  %v979_v5 = vsel %vm961_vm13, %v721_v58, %v970_v60 }
 0x1c4   : > { %1276 = vrcp.f32 %v1012_v39  ;;  %v1013_v42 = vadd.f32 1.0, %v1275_v38 }
 0x1c5   : > { %1278 = vpow2.f32 %v1169_v41  ;;  %v1170_v44 = vmul.f32 -1.442695, %v727_v1 }
 0x1c6   : > { %1280 = vrcp.f32 %v1013_v42 }
 0x1c7   : > { %1282 = vpow2.f32 %v1170_v44 }
 0x1d1   : > { %v1277_v51 = vpop.eup %1276 }
 0x1d2   : > { %v1279_v54 = vpop.eup %1278  ;;  %v1039_v55 = vmul.f32 %v1277_v51, %v976_v50 }
 0x1d3   : > { %v1281_v56 = vpop.eup %1280  ;;  %v1014_v52 = vadd.f32 1.0, %v1279_v54 }
 0x1d4   : > { %v1283_v47 = vpop.eup %1282  ;;  %v1040_v9 = vmul.f32 %v1281_v56, %v977_v53  ;;  %1048 = vst [vmem:[%s1938_s30] sm:$0xff] %v1039_v55 }
 0x1d5   : > { %1284 = vrcp.f32 %v1014_v52  ;;  %v1015_v57 = vadd.f32 1.0, %v1283_v47 }
 0x1d6   : > { %1049 = vst [vmem:[%s1938_s30 + $0x8] sm:$0xff] %v1040_v9 }
 0x1d7   : > { %1286 = vrcp.f32 %v1015_v57 }
 0x1e2   : > { %v1285_v63 = vpop.eup %1284 }
 0x1e3   : > { %v1041_v0 = vmul.f32 %v1285_v63, %v978_v62 }
 0x1e4   : > { %v1287_v4 = vpop.eup %1286  ;;  %v795_v7 = vpop.f32.mrf.mxu0 }
 0x1e5   : > { %v1042_v11 = vmul.f32 %v1287_v4, %v979_v5  ;;  %1050 = vst [vmem:[%s1938_s30 + $0x10] sm:$0xff] %v1041_v0  ;;  %v796_v10 = vadd.f32 %v795_v7, %v1933_v43 }
 0x1e6   : > { %v797_v61 = vpop.f32.mrf.mxu0 }
 0x1e7   : > { %1051 = vst [vmem:[%s1938_s30 + $0x18] sm:$0xff] %v1042_v11  ;;  %v798_v28 = vadd.f32 %v797_v61, %v1933_v43  ;;  %v971_v30 = vmul.f32 0.2, %v796_v10  ;;  %vm962_vm14 = vcmp.gt.f32.partialorder %v796_v10, 0.0 }
 0x1e8   : > { %v801_v14 = vpop.f32.mrf.mxu0 }
 0x1e9   : > { %v802_v16 = vadd.f32 %v801_v14, %v1927_v27  ;;  %v972_v33 = vmul.f32 0.2, %v798_v28  ;;  %vm963_vm15 = vcmp.gt.f32.partialorder %v798_v28, 0.0  ;;  %v980_v36 = vsel %vm962_vm14, %v796_v10, %v971_v30 }
 0x1ea   : > { %v803_v3 = vpop.f32.mrf.mxu0 }
 0x1eb   : > { %v1171_v17 = vmul.f32 -1.442695, %v802_v16  ;;  %v804_v18 = vadd.f32 %v803_v3, %v1927_v27  ;;  %v981_v39 = vsel %vm963_vm15, %v798_v28, %v972_v33 }
 0x1ed   : > { %1288 = vpow2.f32 %v1171_v17  ;;  %v1172_v19 = vmul.f32 -1.442695, %v804_v18 }
 0x1ef   : > { %1290 = vpow2.f32 %v1172_v19 }
 0x1fa   : > { %v1289_v20 = vpop.eup %1288 }
 0x1fb   : > { %v1016_v21 = vadd.f32 1.0, %v1289_v20 }
 0x1fc   : > { %v1291_v23 = vpop.eup %1290  ;;  %v872_v15 = vpop.f32.mrf.mxu1 }
 0x1fd   : > { %1292 = vrcp.f32 %v1016_v21  ;;  %v1017_v22 = vadd.f32 1.0, %v1291_v23  ;;  %v873_v45 = vadd.f32 %v872_v15, %v1933_v43 }
 0x1fe   : > { %v874_v24 = vpop.f32.mrf.mxu1 }
 0x1ff   : > { %1294 = vrcp.f32 %v1017_v22  ;;  %v875_v46 = vadd.f32 %v874_v24, %v1933_v43  ;;  %v973_v49 = vmul.f32 0.2, %v873_v45  ;;  %vm964_vm0 = vcmp.gt.f32.partialorder %v873_v45, 0.0 }
 0x200   : > { %v878_v25 = vpop.f32.mrf.mxu1 }
 0x201   : > { %v879_v12 = vadd.f32 %v878_v25, %v1927_v27  ;;  %v974_v50 = vmul.f32 0.2, %v875_v46  ;;  %vm965_vm1 = vcmp.gt.f32.partialorder %v875_v46, 0.0  ;;  %v982_v54 = vsel %vm964_vm0, %v873_v45, %v973_v49 }
 0x202   : > { %v880_v2 = vpop.f32.mrf.mxu1 }
 0x203   : > { %v1173_v8 = vmul.f32 -1.442695, %v879_v12  ;;  %v881_v26 = vadd.f32 %v880_v2, %v1927_v27  ;;  %v983_v52 = vsel %vm965_vm1, %v875_v46, %v974_v50 }
 0x205   : > { %1296 = vpow2.f32 %v1173_v8  ;;  %v1174_v29 = vmul.f32 -1.442695, %v881_v26 }
 0x206   : > { %v1198_v31 = vpop.f32.mrf.mxu0 }
 0x207   : > { %1298 = vpow2.f32 %v1174_v29  ;;  %v955_v32 = vadd.f32 %v1198_v31, %v1927_v27 }
 0x208   : > { %v949_v48 = vpop.f32.mrf.mxu0 }
 0x209   : > { %v1175_v13 = vmul.f32 -1.442695, %v955_v32  ;;  %v950_v51 = vadd.f32 %v949_v48, %v1933_v43 }
 0x20a   : > { %v1293_v35 = vpop.eup %1292 }
 0x20b   : > { %v1043_v37 = vmul.f32 %v1293_v35, %v980_v36  ;;  %1300 = vpow2.f32 %v1175_v13  ;;  %v975_v47 = vmul.f32 0.2, %v950_v51  ;;  %vm966_vm2 = vcmp.gt.f32.partialorder %v950_v51, 0.0 }
 0x20c   : > { %v1295_v34 = vpop.eup %1294 }
 0x20d   : > { %v1044_v40 = vmul.f32 %v1295_v34, %v981_v39  ;;  %1052 = vst [vmem:[%s1938_s30 + $0x20] sm:$0xff] %v1043_v37  ;;  %v984_v6 = vsel %vm966_vm2, %v950_v51, %v975_v47 }
 0x20f   : > { %1053 = vst [vmem:[%s1938_s30 + $0x28] sm:$0xff] %v1044_v40 }
 0x212   : > { %v1297_v38 = vpop.eup %1296 }
 0x213   : > { %v1018_v41 = vadd.f32 1.0, %v1297_v38 }
 0x214   : > { %v1299_v1 = vpop.eup %1298 }
 0x215   : > { %1302 = vrcp.f32 %v1018_v41  ;;  %v1019_v42 = vadd.f32 1.0, %v1299_v1 }
 0x217   : > { %1304 = vrcp.f32 %v1019_v42 }
 0x218   : > { %v1301_v44 = vpop.eup %1300 }
 0x219   : > { %v1020_v27 = vadd.f32 1.0, %v1301_v44 }
 0x21b   : > { %1306 = vrcp.f32 %v1020_v27 }
 0x222   : > { %v1303_v53 = vpop.eup %1302 }
 0x223   : > { %v1045_v55 = vmul.f32 %v1303_v53, %v982_v54 }
 0x224   : > { %v1305_v56 = vpop.eup %1304 }
 0x225   : > { %1054 = vst [vmem:[%s1938_s30 + $0x30] sm:$0xff] %v1045_v55  ;;  %v1046_v9 = vmul.f32 %v1305_v56, %v983_v52 }
 0x227   : > { %1055 = vst [vmem:[%s1938_s30 + $0x38] sm:$0xff] %v1046_v9 }
 0x228   : > { %v1307_v57 = vpop.eup %1306 }
 0x229   : > { %v1047_v43 = vmul.f32 %v1307_v57, %v984_v6 }
 0x22b   : > { %1057 = vst.msk [vmem:[%s1938_s30 + $0x40] sm:$0xff] %vm1056_vm3, %v1047_v43 }
 0x22c   : > { %1349 = shalt.err (!%p1346_p10)
}
 0x22d   : > { %s1350_s20 = scalar_lea.hbm %s1071_s9, 1152  ;;  %s1354_s26 = scalar_lea.hbm %s2000_s3, 2304 }
 0x22e   : > { %p1351_p2 = scmp.ne.s32.totalorder %s1071_s9, %s1350_s20  ;;  %p1355_p7 = scmp.lt.s32.totalorder %s1071_s9, %s2000_s3 }
 0x22f   : > { %p1356_p5 = scmp.lt.s32.totalorder %s1354_s26, %s1350_s20 }
 0x230   : > { %p1352_p4 = pnand %p1351_p2, %p2010_p12 }
 0x231   : > { %p1357_p6 = por %p1356_p5, %p1355_p7 }
 0x232   : > { %p1353_p9 = pneg %p1352_p4 }
 0x234   : > { %p1358_p11 = pnand %p1357_p6, %p1353_p9 }
 0x236   : > { %1361 = shalt.err (!%p1358_p11)
}
 0x237   : > { %1206 = dma.vmem_to_hbm [thread:$0]  (%p2010_p12), %s1074_s22, 1152, %s1071_s9, %s1059_s10  }
 0x238 PF: > { %s1085_s5 = sand.u32 1, %s1388_s12   ;;  %p2011_p13 = scmp.ne.s32.totalorder %s2005_s24, 0 }
 0x239   : > { %p2012_p0 = scmp.ge.s32.totalorder %s1400_s15, 2  ;;  %s1086_s8 = scalar_lea.sflag [#allocation4], %s1085_s5 }
 0x23b   : > { %p1213_p1 = pnand %p2012_p0, %p2011_p13 }
 0x23d   : > { %p1214_p3 = pneg %p1213_p1 }
 0x23f   : > { %1383 = dma.done.wait (%p1214_p3), %s1086_s8, 1152  }
 0x240   : > { %1385 = vsyncadd (%p1214_p3), %s1086_s8, 4294966144  ;;  %p16_p8 = scmp.ge.s32.totalorder %s1459_s18, 4   ;;  %s2013_s12 = smov %s1392_s13 }
 0x241   : > { %s2014_s13 = smov %s1396_s14  ;;  %s2015_s14 = smov %s1471_s21 }
 0x242   : > { %s2016_s15 = smov %s1459_s18  ;;  %18 = sbr.rel (!%p16_p8) target bundleno = 5 (0x5), region = 77 }
 0x247   :  { %1091 = vsyncpa [#allocation3], 1 }
 0x248   :  { %1093 = vsyncpa [#allocation3 + $0x1], 1 }
 0x249   :  { %1094 = vsyncpa [#allocation4], 1 }
 0x24a   :  { %1096 = vsyncpa [#allocation4 + $0x1], 1 }

</bundles_post_ra>
